<compile_context>
chip_gen: v7x
topology: tpu7x:2x2x1
jax: 0.10.0
libtpu: 0.0.40
codegen_flags: <defaults>
</compile_context>

<pallas_src>
import math

import jax
import jax.numpy as jnp
from jax.experimental import pallas as pl
from jax.experimental.pallas import tpu as pltpu

# Small, self-consistent config.
BATCH = 2
SEQ = 8
NUM_HEADS = 4
HEAD_SIZE = 8
HIDDEN = NUM_HEADS * HEAD_SIZE  # 32
SCALE = 1.0 / math.sqrt(HEAD_SIZE)
MASK_VALUE = -10000.0


def _bert_self_attn_kernel(x_ref, mask_ref, w_ref, b_ref, o_ref):
    # x_ref:    (B, S, HIDDEN)        whole batch, resident in VMEM
    # mask_ref: (B, 1, 1, S)          additive BERT mask (0 keep / -10000 masked)
    # w_ref:    (HIDDEN, 3*HIDDEN)    fused [Wq | Wk | Wv], pre-transposed (in, out)
    # b_ref:    (1, 3*HIDDEN)         fused [bq | bk | bv]
    # o_ref:    (B, S, HIDDEN)        lane-dense context (heads packed along lanes)

    # Merge the two leading (major) dims -- a layout no-op on TPU.
    x = x_ref[...].reshape(BATCH * SEQ, HIDDEN)                      # (B*S, HIDDEN)

    # ---- fused QKV projection: one MXU push, 96-lane-wide f32 result ------
    qkv = jnp.dot(x.astype(jnp.bfloat16),
                  w_ref[...].astype(jnp.bfloat16),
                  preferred_element_type=jnp.float32) + b_ref[...]   # (B*S, 3*HIDDEN)

    # ---- pack heads into a batch axis: (B*H, S, D) -------------------------
    # Static sublane/lane slices stacked on a new leading axis; no per-head
    # matmuls and no lane-splitting reshapes.
    def split_heads(col0):
        return jnp.stack(
            [qkv[b * SEQ:(b + 1) * SEQ,
                 col0 + h * HEAD_SIZE: col0 + (h + 1) * HEAD_SIZE]
             for b in range(BATCH) for h in range(NUM_HEADS)],
            axis=0)

    q = split_heads(0)               # (B*H, S, D) float32
    k = split_heads(HIDDEN)          # (B*H, S, D) float32
    v = split_heads(2 * HIDDEN)      # (B*H, S, D) float32

    # ---- scores: one batched matmul over all (batch, head) pairs ----------
    # Contract the head dim of q and k directly (no k.T materialization).
    s = jnp.einsum("bqd,bkd->bqk", q, k,
                   preferred_element_type=jnp.float32) * SCALE       # (B*H, S, S)

    # Mask computed once (not per head); float32 throughout.
    neg = jnp.stack([mask_ref[b, 0] == MASK_VALUE
                     for b in range(BATCH) for _ in range(NUM_HEADS)],
                    axis=0)                                           # (B*H, 1, S) bool
    s = jnp.where(jnp.broadcast_to(neg, s.shape), MASK_VALUE, s)

    # ---- softmax along keys, in float32; reciprocal on the EUP ------------
    s = s - jnp.max(s, axis=-1, keepdims=True)
    p = jnp.exp(s)
    p = p * pl.reciprocal(jnp.sum(p, axis=-1, keepdims=True), approx=True)

    # ---- context: one batched PV matmul, bf16 operands / f32 accumulation --
    ctx = jnp.einsum("bqk,bkd->bqd",
                     p.astype(jnp.bfloat16), v.astype(jnp.bfloat16),
                     preferred_element_type=jnp.float32)              # (B*H, S, D)

    # ---- single lane-dense store of (B, S, HIDDEN) -------------------------
    out = jnp.stack(
        [jnp.concatenate([ctx[b * NUM_HEADS + h] for h in range(NUM_HEADS)],
                         axis=-1)                                     # (S, HIDDEN)
         for b in range(BATCH)],
        axis=0)                                                       # (B, S, HIDDEN)
    o_ref[...] = out.astype(o_ref.dtype)


def bert_self_attention(hidden_states, attention_mask, wq, bq, wk, bk, wv, bv):
    B, S, Hd = hidden_states.shape
    assert (B, S, Hd) == (BATCH, SEQ, HIDDEN)

    # Fuse the three projections (wrapper-side, free XLA plumbing).
    w_qkv = jnp.concatenate([wq, wk, wv], axis=1)    # (HIDDEN, 3*HIDDEN)
    b_qkv = jnp.concatenate([bq, bk, bv], axis=1)    # (1, 3*HIDDEN)

    out = pl.pallas_call(
        _bert_self_attn_kernel,
        out_shape=jax.ShapeDtypeStruct((B, S, Hd), jnp.float32),
        in_specs=[
            pl.BlockSpec(memory_space=pltpu.MemorySpace.VMEM),   # hidden_states
            pl.BlockSpec(memory_space=pltpu.MemorySpace.VMEM),   # attention_mask
            pl.BlockSpec(memory_space=pltpu.MemorySpace.VMEM),   # fused W_qkv
            pl.BlockSpec(memory_space=pltpu.MemorySpace.VMEM),   # fused b_qkv
        ],
        out_specs=pl.BlockSpec(memory_space=pltpu.MemorySpace.VMEM),
    )(hidden_states, attention_mask, w_qkv, b_qkv)

    # Kernel output is lane-dense (B, S, HIDDEN); present the module's
    # (B, num_heads, S, head_size) layout via a wrapper-side transpose.
    return jnp.transpose(out.reshape(B, S, NUM_HEADS, HEAD_SIZE), (0, 2, 1, 3))


def reference_forward(hidden_states, attention_mask, wq, bq, wk, bk, wv, bv):
    """Pure-JAX replica of the PyTorch module for correctness checking."""
    B, S, Hd = hidden_states.shape

    def transform(w, b):
        proj = hidden_states @ w + b                                # (B, S, Hd)
        proj = proj.reshape(B, S, NUM_HEADS, HEAD_SIZE)
        return jnp.transpose(proj, (0, 2, 1, 3))                    # (B, H, S, D)

    q = transform(wq, bq)
    k = transform(wk, bk)
    v = transform(wv, bv)
    scores = jnp.einsum("bhqd,bhkd->bhqk", q, k) * SCALE
    scores = jnp.where(attention_mask == MASK_VALUE, MASK_VALUE, scores)
    probs = jax.nn.softmax(scores, axis=-1)
    return jnp.einsum("bhqk,bhkd->bhqd", probs, v)


if __name__ == "__main__":
    key = jax.random.PRNGKey(0)
    kx, kq, kbq, kk, kbk, kv, kbv = jax.random.split(key, 7)

    # Inputs.
    hidden_states = jax.random.normal(kx, (BATCH, SEQ, HIDDEN), dtype=jnp.float32)

    # Standard BERT additive mask: mask out the last 3 tokens of batch 1.
    mask = jnp.zeros((BATCH, 1, 1, SEQ), dtype=jnp.float32)
    mask = mask.at[1, 0, 0, SEQ - 3:].set(MASK_VALUE)

    # Deterministic parameter init (nn.Linear-style; stored pre-transposed as
    # (in, out) so the kernel computes x @ W + b).
    bound = 1.0 / math.sqrt(HIDDEN)
    wq = jax.random.uniform(kq, (HIDDEN, HIDDEN), jnp.float32, -bound, bound)
    bq = jax.random.uniform(kbq, (1, HIDDEN), jnp.float32, -bound, bound)
    wk = jax.random.uniform(kk, (HIDDEN, HIDDEN), jnp.float32, -bound, bound)
    bk = jax.random.uniform(kbk, (1, HIDDEN), jnp.float32, -bound, bound)
    wv = jax.random.uniform(kv, (HIDDEN, HIDDEN), jnp.float32, -bound, bound)
    bv = jax.random.uniform(kbv, (1, HIDDEN), jnp.float32, -bound, bound)

    out = bert_self_attention(hidden_states, mask, wq, bq, wk, bk, wv, bv)
    out = jax.block_until_ready(out)

    ref = reference_forward(hidden_states, mask, wq, bq, wk, bk, wv, bv)
    assert out.shape == (BATCH, NUM_HEADS, SEQ, HEAD_SIZE)
    # Tolerance covers bf16 MXU operands + approx reciprocal (f32 reference).
    assert jnp.allclose(out, ref, atol=2e-2, rtol=2e-2), \
        f"max abs err {jnp.max(jnp.abs(out - ref))}"

    print("KERNEL_OK")
</pallas_src>

<mosaic_0001>
module attributes {stable_mosaic.version = 11 : i64} {
  func.func @_bert_self_attn_kernel(%arg0: memref<2x8x32xf32, #tpu.memory_space<vmem>>, %arg1: memref<2x1x1x8xf32, #tpu.memory_space<vmem>>, %arg2: memref<32x96xf32, #tpu.memory_space<vmem>>, %arg3: memref<1x96xf32, #tpu.memory_space<vmem>>, %arg4: memref<2x8x32xf32, #tpu.memory_space<vmem>>) attributes {dimension_semantics = [], scalar_prefetch = 0 : i64, scratch_operands = 0 : i64, tpu.core_type = #tpu.core_type<tc>} {
    %c0 = arith.constant 0 : index
    %c0_0 = arith.constant 0 : index
    %c0_1 = arith.constant 0 : index
    %0 = vector.load %arg0[%c0, %c0_0, %c0_1] : memref<2x8x32xf32, #tpu.memory_space<vmem>>, vector<2x8x32xf32>
    %1 = vector.shape_cast %0 : vector<2x8x32xf32> to vector<16x32xf32>
    %2 = arith.truncf %1 : vector<16x32xf32> to vector<16x32xbf16>
    %c0_2 = arith.constant 0 : index
    %c0_3 = arith.constant 0 : index
    %3 = vector.load %arg2[%c0_2, %c0_3] : memref<32x96xf32, #tpu.memory_space<vmem>>, vector<32x96xf32>
    %4 = arith.truncf %3 : vector<32x96xf32> to vector<32x96xbf16>
    %cst = arith.constant dense<0.000000e+00> : vector<16x96xf32>
    %5 = tpu.matmul %2, %4, %cst {dimension_numbers = #tpu.dot_dimension_numbers<[1], [0], [0], [1], [0, 0, 1, 1], [], []>} : vector<16x32xbf16>, vector<32x96xbf16>, vector<16x96xf32> -> vector<16x96xf32>
    %c0_4 = arith.constant 0 : index
    %c0_5 = arith.constant 0 : index
    %6 = vector.load %arg3[%c0_4, %c0_5] : memref<1x96xf32, #tpu.memory_space<vmem>>, vector<1x96xf32>
    %7 = vector.broadcast %6 : vector<1x96xf32> to vector<16x96xf32>
    %8 = arith.addf %5, %7 : vector<16x96xf32>
    %9 = vector.extract_strided_slice %8 {offsets = [0, 0], sizes = [8, 8], strides = [1, 1]} : vector<16x96xf32> to vector<8x8xf32>
    %10 = vector.extract_strided_slice %8 {offsets = [0, 8], sizes = [8, 8], strides = [1, 1]} : vector<16x96xf32> to vector<8x8xf32>
    %11 = vector.extract_strided_slice %8 {offsets = [0, 16], sizes = [8, 8], strides = [1, 1]} : vector<16x96xf32> to vector<8x8xf32>
    %12 = vector.extract_strided_slice %8 {offsets = [0, 24], sizes = [8, 8], strides = [1, 1]} : vector<16x96xf32> to vector<8x8xf32>
    %13 = vector.extract_strided_slice %8 {offsets = [8, 0], sizes = [8, 8], strides = [1, 1]} : vector<16x96xf32> to vector<8x8xf32>
    %14 = vector.extract_strided_slice %8 {offsets = [8, 8], sizes = [8, 8], strides = [1, 1]} : vector<16x96xf32> to vector<8x8xf32>
    %15 = vector.extract_strided_slice %8 {offsets = [8, 16], sizes = [8, 8], strides = [1, 1]} : vector<16x96xf32> to vector<8x8xf32>
    %16 = vector.extract_strided_slice %8 {offsets = [8, 24], sizes = [8, 8], strides = [1, 1]} : vector<16x96xf32> to vector<8x8xf32>
    %17 = vector.shape_cast %9 : vector<8x8xf32> to vector<1x8x8xf32>
    %18 = vector.shape_cast %10 : vector<8x8xf32> to vector<1x8x8xf32>
    %19 = vector.shape_cast %11 : vector<8x8xf32> to vector<1x8x8xf32>
    %20 = vector.shape_cast %12 : vector<8x8xf32> to vector<1x8x8xf32>
    %21 = vector.shape_cast %13 : vector<8x8xf32> to vector<1x8x8xf32>
    %22 = vector.shape_cast %14 : vector<8x8xf32> to vector<1x8x8xf32>
    %23 = vector.shape_cast %15 : vector<8x8xf32> to vector<1x8x8xf32>
    %24 = vector.shape_cast %16 : vector<8x8xf32> to vector<1x8x8xf32>
    %25 = tpu.concatenate %17, %18, %19, %20, %21, %22, %23, %24 in 0 : vector<1x8x8xf32>, vector<1x8x8xf32>, vector<1x8x8xf32>, vector<1x8x8xf32>, vector<1x8x8xf32>, vector<1x8x8xf32>, vector<1x8x8xf32>, vector<1x8x8xf32> -> vector<8x8x8xf32>
    %26 = vector.extract_strided_slice %8 {offsets = [0, 32], sizes = [8, 8], strides = [1, 1]} : vector<16x96xf32> to vector<8x8xf32>
    %27 = vector.extract_strided_slice %8 {offsets = [0, 40], sizes = [8, 8], strides = [1, 1]} : vector<16x96xf32> to vector<8x8xf32>
    %28 = vector.extract_strided_slice %8 {offsets = [0, 48], sizes = [8, 8], strides = [1, 1]} : vector<16x96xf32> to vector<8x8xf32>
    %29 = vector.extract_strided_slice %8 {offsets = [0, 56], sizes = [8, 8], strides = [1, 1]} : vector<16x96xf32> to vector<8x8xf32>
    %30 = vector.extract_strided_slice %8 {offsets = [8, 32], sizes = [8, 8], strides = [1, 1]} : vector<16x96xf32> to vector<8x8xf32>
    %31 = vector.extract_strided_slice %8 {offsets = [8, 40], sizes = [8, 8], strides = [1, 1]} : vector<16x96xf32> to vector<8x8xf32>
    %32 = vector.extract_strided_slice %8 {offsets = [8, 48], sizes = [8, 8], strides = [1, 1]} : vector<16x96xf32> to vector<8x8xf32>
    %33 = vector.extract_strided_slice %8 {offsets = [8, 56], sizes = [8, 8], strides = [1, 1]} : vector<16x96xf32> to vector<8x8xf32>
    %34 = vector.shape_cast %26 : vector<8x8xf32> to vector<1x8x8xf32>
    %35 = vector.shape_cast %27 : vector<8x8xf32> to vector<1x8x8xf32>
    %36 = vector.shape_cast %28 : vector<8x8xf32> to vector<1x8x8xf32>
    %37 = vector.shape_cast %29 : vector<8x8xf32> to vector<1x8x8xf32>
    %38 = vector.shape_cast %30 : vector<8x8xf32> to vector<1x8x8xf32>
    %39 = vector.shape_cast %31 : vector<8x8xf32> to vector<1x8x8xf32>
    %40 = vector.shape_cast %32 : vector<8x8xf32> to vector<1x8x8xf32>
    %41 = vector.shape_cast %33 : vector<8x8xf32> to vector<1x8x8xf32>
    %42 = tpu.concatenate %34, %35, %36, %37, %38, %39, %40, %41 in 0 : vector<1x8x8xf32>, vector<1x8x8xf32>, vector<1x8x8xf32>, vector<1x8x8xf32>, vector<1x8x8xf32>, vector<1x8x8xf32>, vector<1x8x8xf32>, vector<1x8x8xf32> -> vector<8x8x8xf32>
    %43 = vector.extract_strided_slice %8 {offsets = [0, 64], sizes = [8, 8], strides = [1, 1]} : vector<16x96xf32> to vector<8x8xf32>
    %44 = vector.extract_strided_slice %8 {offsets = [0, 72], sizes = [8, 8], strides = [1, 1]} : vector<16x96xf32> to vector<8x8xf32>
    %45 = vector.extract_strided_slice %8 {offsets = [0, 80], sizes = [8, 8], strides = [1, 1]} : vector<16x96xf32> to vector<8x8xf32>
    %46 = vector.extract_strided_slice %8 {offsets = [0, 88], sizes = [8, 8], strides = [1, 1]} : vector<16x96xf32> to vector<8x8xf32>
    %47 = vector.extract_strided_slice %8 {offsets = [8, 64], sizes = [8, 8], strides = [1, 1]} : vector<16x96xf32> to vector<8x8xf32>
    %48 = vector.extract_strided_slice %8 {offsets = [8, 72], sizes = [8, 8], strides = [1, 1]} : vector<16x96xf32> to vector<8x8xf32>
    %49 = vector.extract_strided_slice %8 {offsets = [8, 80], sizes = [8, 8], strides = [1, 1]} : vector<16x96xf32> to vector<8x8xf32>
    %50 = vector.extract_strided_slice %8 {offsets = [8, 88], sizes = [8, 8], strides = [1, 1]} : vector<16x96xf32> to vector<8x8xf32>
    %51 = vector.shape_cast %43 : vector<8x8xf32> to vector<1x8x8xf32>
    %52 = vector.shape_cast %44 : vector<8x8xf32> to vector<1x8x8xf32>
    %53 = vector.shape_cast %45 : vector<8x8xf32> to vector<1x8x8xf32>
    %54 = vector.shape_cast %46 : vector<8x8xf32> to vector<1x8x8xf32>
    %55 = vector.shape_cast %47 : vector<8x8xf32> to vector<1x8x8xf32>
    %56 = vector.shape_cast %48 : vector<8x8xf32> to vector<1x8x8xf32>
    %57 = vector.shape_cast %49 : vector<8x8xf32> to vector<1x8x8xf32>
    %58 = vector.shape_cast %50 : vector<8x8xf32> to vector<1x8x8xf32>
    %59 = tpu.concatenate %51, %52, %53, %54, %55, %56, %57, %58 in 0 : vector<1x8x8xf32>, vector<1x8x8xf32>, vector<1x8x8xf32>, vector<1x8x8xf32>, vector<1x8x8xf32>, vector<1x8x8xf32>, vector<1x8x8xf32>, vector<1x8x8xf32> -> vector<8x8x8xf32>
    "tpu.trace_start"() <{level = 10 : i32, message = "bqd,bkd->bqk"}> : () -> ()
    %cst_6 = arith.constant dense<0.000000e+00> : vector<8x8x8xf32>
    %60 = tpu.matmul %25, %42, %cst_6 {dimension_numbers = #tpu.dot_dimension_numbers<[2], [2], [1], [1], [0, 0, 0, 1, 1, 1], [0], [0]>} : vector<8x8x8xf32>, vector<8x8x8xf32>, vector<8x8x8xf32> -> vector<8x8x8xf32>
    "tpu.trace_stop"() : () -> ()
    %cst_7 = arith.constant 0.353553385 : f32
    %61 = vector.broadcast %cst_7 : f32 to vector<8x8x8xf32>
    %62 = arith.mulf %60, %61 : vector<8x8x8xf32>
    %c0_8 = arith.constant 0 : index
    %c0_9 = arith.constant 0 : index
    %c0_10 = arith.constant 0 : index
    %c0_11 = arith.constant 0 : index
    %63 = vector.load %arg1[%c0_8, %c0_9, %c0_10, %c0_11] : memref<2x1x1x8xf32, #tpu.memory_space<vmem>>, vector<1x1x1x8xf32>
    %64 = vector.shape_cast %63 : vector<1x1x1x8xf32> to vector<1x8xf32>
    %cst_12 = arith.constant -1.000000e+04 : f32
    %65 = vector.broadcast %cst_12 : f32 to vector<1x8xf32>
    %66 = arith.cmpf oeq, %64, %65 : vector<1x8xf32>
    %c0_13 = arith.constant 0 : index
    %c0_14 = arith.constant 0 : index
    %c0_15 = arith.constant 0 : index
    %c0_16 = arith.constant 0 : index
    %67 = vector.load %arg1[%c0_13, %c0_14, %c0_15, %c0_16] : memref<2x1x1x8xf32, #tpu.memory_space<vmem>>, vector<1x1x1x8xf32>
    %68 = vector.shape_cast %67 : vector<1x1x1x8xf32> to vector<1x8xf32>
    %cst_17 = arith.constant -1.000000e+04 : f32
    %69 = vector.broadcast %cst_17 : f32 to vector<1x8xf32>
    %70 = arith.cmpf oeq, %68, %69 : vector<1x8xf32>
    %c0_18 = arith.constant 0 : index
    %c0_19 = arith.constant 0 : index
    %c0_20 = arith.constant 0 : index
    %c0_21 = arith.constant 0 : index
    %71 = vector.load %arg1[%c0_18, %c0_19, %c0_20, %c0_21] : memref<2x1x1x8xf32, #tpu.memory_space<vmem>>, vector<1x1x1x8xf32>
    %72 = vector.shape_cast %71 : vector<1x1x1x8xf32> to vector<1x8xf32>
    %cst_22 = arith.constant -1.000000e+04 : f32
    %73 = vector.broadcast %cst_22 : f32 to vector<1x8xf32>
    %74 = arith.cmpf oeq, %72, %73 : vector<1x8xf32>
    %c0_23 = arith.constant 0 : index
    %c0_24 = arith.constant 0 : index
    %c0_25 = arith.constant 0 : index
    %c0_26 = arith.constant 0 : index
    %75 = vector.load %arg1[%c0_23, %c0_24, %c0_25, %c0_26] : memref<2x1x1x8xf32, #tpu.memory_space<vmem>>, vector<1x1x1x8xf32>
    %76 = vector.shape_cast %75 : vector<1x1x1x8xf32> to vector<1x8xf32>
    %cst_27 = arith.constant -1.000000e+04 : f32
    %77 = vector.broadcast %cst_27 : f32 to vector<1x8xf32>
    %78 = arith.cmpf oeq, %76, %77 : vector<1x8xf32>
    %c1 = arith.constant 1 : index
    %c0_28 = arith.constant 0 : index
    %c0_29 = arith.constant 0 : index
    %c0_30 = arith.constant 0 : index
    %79 = vector.load %arg1[%c1, %c0_28, %c0_29, %c0_30] : memref<2x1x1x8xf32, #tpu.memory_space<vmem>>, vector<1x1x1x8xf32>
    %80 = vector.shape_cast %79 : vector<1x1x1x8xf32> to vector<1x8xf32>
    %cst_31 = arith.constant -1.000000e+04 : f32
    %81 = vector.broadcast %cst_31 : f32 to vector<1x8xf32>
    %82 = arith.cmpf oeq, %80, %81 : vector<1x8xf32>
    %c1_32 = arith.constant 1 : index
    %c0_33 = arith.constant 0 : index
    %c0_34 = arith.constant 0 : index
    %c0_35 = arith.constant 0 : index
    %83 = vector.load %arg1[%c1_32, %c0_33, %c0_34, %c0_35] : memref<2x1x1x8xf32, #tpu.memory_space<vmem>>, vector<1x1x1x8xf32>
    %84 = vector.shape_cast %83 : vector<1x1x1x8xf32> to vector<1x8xf32>
    %cst_36 = arith.constant -1.000000e+04 : f32
    %85 = vector.broadcast %cst_36 : f32 to vector<1x8xf32>
    %86 = arith.cmpf oeq, %84, %85 : vector<1x8xf32>
    %c1_37 = arith.constant 1 : index
    %c0_38 = arith.constant 0 : index
    %c0_39 = arith.constant 0 : index
    %c0_40 = arith.constant 0 : index
    %87 = vector.load %arg1[%c1_37, %c0_38, %c0_39, %c0_40] : memref<2x1x1x8xf32, #tpu.memory_space<vmem>>, vector<1x1x1x8xf32>
    %88 = vector.shape_cast %87 : vector<1x1x1x8xf32> to vector<1x8xf32>
    %cst_41 = arith.constant -1.000000e+04 : f32
    %89 = vector.broadcast %cst_41 : f32 to vector<1x8xf32>
    %90 = arith.cmpf oeq, %88, %89 : vector<1x8xf32>
    %c1_42 = arith.constant 1 : index
    %c0_43 = arith.constant 0 : index
    %c0_44 = arith.constant 0 : index
    %c0_45 = arith.constant 0 : index
    %91 = vector.load %arg1[%c1_42, %c0_43, %c0_44, %c0_45] : memref<2x1x1x8xf32, #tpu.memory_space<vmem>>, vector<1x1x1x8xf32>
    %92 = vector.shape_cast %91 : vector<1x1x1x8xf32> to vector<1x8xf32>
    %cst_46 = arith.constant -1.000000e+04 : f32
    %93 = vector.broadcast %cst_46 : f32 to vector<1x8xf32>
    %94 = arith.cmpf oeq, %92, %93 : vector<1x8xf32>
    %95 = vector.shape_cast %66 : vector<1x8xi1> to vector<1x1x8xi1>
    %96 = vector.shape_cast %70 : vector<1x8xi1> to vector<1x1x8xi1>
    %97 = vector.shape_cast %74 : vector<1x8xi1> to vector<1x1x8xi1>
    %98 = vector.shape_cast %78 : vector<1x8xi1> to vector<1x1x8xi1>
    %99 = vector.shape_cast %82 : vector<1x8xi1> to vector<1x1x8xi1>
    %100 = vector.shape_cast %86 : vector<1x8xi1> to vector<1x1x8xi1>
    %101 = vector.shape_cast %90 : vector<1x8xi1> to vector<1x1x8xi1>
    %102 = vector.shape_cast %94 : vector<1x8xi1> to vector<1x1x8xi1>
    %103 = tpu.concatenate %95, %96, %97, %98, %99, %100, %101, %102 in 0 : vector<1x1x8xi1>, vector<1x1x8xi1>, vector<1x1x8xi1>, vector<1x1x8xi1>, vector<1x1x8xi1>, vector<1x1x8xi1>, vector<1x1x8xi1>, vector<1x1x8xi1> -> vector<8x1x8xi1>
    %104 = vector.shape_cast %103 : vector<8x1x8xi1> to vector<8x1x8xi1>
    %105 = vector.broadcast %104 : vector<8x1x8xi1> to vector<8x8x8xi1>
    %cst_47 = arith.constant -1.000000e+04 : f32
    %106 = vector.broadcast %cst_47 : f32 to vector<8x8x8xf32>
    %107 = arith.select %105, %106, %62 : vector<8x8x8xi1>, vector<8x8x8xf32>
    %cst_48 = arith.constant dense<0xFF800000> : vector<8x8xf32>
    %108 = vector.multi_reduction <maximumf>, %107, %cst_48 [2] : vector<8x8x8xf32> to vector<8x8xf32>
    %109 = vector.shape_cast %108 : vector<8x8xf32> to vector<8x8x1xf32>
    %110 = vector.broadcast %109 : vector<8x8x1xf32> to vector<8x8x8xf32>
    %111 = arith.subf %107, %110 : vector<8x8x8xf32>
    %112 = math.exp %111 : vector<8x8x8xf32>
    %cst_49 = arith.constant dense<0.000000e+00> : vector<8x8xf32>
    %113 = vector.multi_reduction <add>, %112, %cst_49 [2] : vector<8x8x8xf32> to vector<8x8xf32>
    %114 = vector.shape_cast %113 : vector<8x8xf32> to vector<8x8x1xf32>
    %115 = tpu.reciprocal %114 {approx = true} : vector<8x8x1xf32> -> vector<8x8x1xf32>
    %116 = vector.broadcast %115 : vector<8x8x1xf32> to vector<8x8x8xf32>
    %117 = arith.mulf %112, %116 : vector<8x8x8xf32>
    %118 = arith.truncf %117 : vector<8x8x8xf32> to vector<8x8x8xbf16>
    %119 = arith.truncf %59 : vector<8x8x8xf32> to vector<8x8x8xbf16>
    "tpu.trace_start"() <{level = 10 : i32, message = "bqk,bkd->bqd"}> : () -> ()
    %cst_50 = arith.constant dense<0.000000e+00> : vector<8x8x8xf32>
    %120 = tpu.matmul %118, %119, %cst_50 {dimension_numbers = #tpu.dot_dimension_numbers<[2], [1], [1], [2], [0, 0, 0, 1, 1, 2], [0], [0]>} : vector<8x8x8xbf16>, vector<8x8x8xbf16>, vector<8x8x8xf32> -> vector<8x8x8xf32>
    "tpu.trace_stop"() : () -> ()
    %121 = vector.extract_strided_slice %120 {offsets = [0, 0, 0], sizes = [1, 8, 8], strides = [1, 1, 1]} : vector<8x8x8xf32> to vector<1x8x8xf32>
    %122 = vector.shape_cast %121 : vector<1x8x8xf32> to vector<8x8xf32>
    %123 = vector.extract_strided_slice %120 {offsets = [1, 0, 0], sizes = [1, 8, 8], strides = [1, 1, 1]} : vector<8x8x8xf32> to vector<1x8x8xf32>
    %124 = vector.shape_cast %123 : vector<1x8x8xf32> to vector<8x8xf32>
    %125 = vector.extract_strided_slice %120 {offsets = [2, 0, 0], sizes = [1, 8, 8], strides = [1, 1, 1]} : vector<8x8x8xf32> to vector<1x8x8xf32>
    %126 = vector.shape_cast %125 : vector<1x8x8xf32> to vector<8x8xf32>
    %127 = vector.extract_strided_slice %120 {offsets = [3, 0, 0], sizes = [1, 8, 8], strides = [1, 1, 1]} : vector<8x8x8xf32> to vector<1x8x8xf32>
    %128 = vector.shape_cast %127 : vector<1x8x8xf32> to vector<8x8xf32>
    %129 = tpu.concatenate %122, %124, %126, %128 in 1 : vector<8x8xf32>, vector<8x8xf32>, vector<8x8xf32>, vector<8x8xf32> -> vector<8x32xf32>
    %130 = vector.extract_strided_slice %120 {offsets = [4, 0, 0], sizes = [1, 8, 8], strides = [1, 1, 1]} : vector<8x8x8xf32> to vector<1x8x8xf32>
    %131 = vector.shape_cast %130 : vector<1x8x8xf32> to vector<8x8xf32>
    %132 = vector.extract_strided_slice %120 {offsets = [5, 0, 0], sizes = [1, 8, 8], strides = [1, 1, 1]} : vector<8x8x8xf32> to vector<1x8x8xf32>
    %133 = vector.shape_cast %132 : vector<1x8x8xf32> to vector<8x8xf32>
    %134 = vector.extract_strided_slice %120 {offsets = [6, 0, 0], sizes = [1, 8, 8], strides = [1, 1, 1]} : vector<8x8x8xf32> to vector<1x8x8xf32>
    %135 = vector.shape_cast %134 : vector<1x8x8xf32> to vector<8x8xf32>
    %136 = vector.extract_strided_slice %120 {offsets = [7, 0, 0], sizes = [1, 8, 8], strides = [1, 1, 1]} : vector<8x8x8xf32> to vector<1x8x8xf32>
    %137 = vector.shape_cast %136 : vector<1x8x8xf32> to vector<8x8xf32>
    %138 = tpu.concatenate %131, %133, %135, %137 in 1 : vector<8x8xf32>, vector<8x8xf32>, vector<8x8xf32>, vector<8x8xf32> -> vector<8x32xf32>
    %139 = vector.shape_cast %129 : vector<8x32xf32> to vector<1x8x32xf32>
    %140 = vector.shape_cast %138 : vector<8x32xf32> to vector<1x8x32xf32>
    %141 = tpu.concatenate %139, %140 in 0 : vector<1x8x32xf32>, vector<1x8x32xf32> -> vector<2x8x32xf32>
    %c0_51 = arith.constant 0 : index
    %c0_52 = arith.constant 0 : index
    %c0_53 = arith.constant 0 : index
    %142 = vector.load %arg4[%c0_51, %c0_52, %c0_53] : memref<2x8x32xf32, #tpu.memory_space<vmem>>, vector<2x8x32xf32>
    tpu.vector_store %arg4[%c0_51, %c0_52, %c0_53], %141 {strides = array<i32>} : memref<2x8x32xf32, #tpu.memory_space<vmem>>, vector<2x8x32xf32>,
    return
  }
}

</mosaic_0001>

<bundles_post_ra>
// kernel: tpu_custom_call.1
= control target key start
LH: loop header
LB: loop body
LE: loop exit
PB: predicated region body
PF: predicated region fallthrough
CT: control target
= control target key end

     0   :  { %9 = vsyncpa [#allocation3], 0  ;;  %s1898_s0 = inlined_call_operand.hbm [shape: f32[2,8,32], index: 0, kind: input, shape index: {}]   ;;  %s1899_s1 = inlined_call_operand.vmem [shape: f32[2,1,1,8], index: 1, kind: input, shape index: {}]   ;;  %s1900_s2 = inlined_call_operand.hbm [shape: f32[32,96], index: 2, kind: input, shape index: {}]   ;;  %s1901_s3 = inlined_call_operand.vmem [shape: f32[1,96], index: 3, kind: input, shape index: {}]   ;;  %s1902_s4 = inlined_call_operand.hbm [shape: f32[2,8,32], index: 4, kind: output, shape index: {}]  }
   0x1   :  { %10 = vsyncpa [#allocation6], 0 }
   0x2   :  { %11 = vsyncpa [#allocation4], 0  ;;  %s1596_s15 = smov [#allocation2]   ;;  %s1524_s19 = scalar_lea.hbm %s1898_s0, 256 }
   0x3   :  { %s17_s16 = sshll.u32 %s1596_s15, 4  ;;  %p1525_p0 = scmp.ne.s32.totalorder %s1898_s0, %s1524_s19  ;;  %s18_s16 = int_to_ptr.vmem [resolvable:$true] %s17_s16 }
   0x4   :  { %p1528_p1 = scmp.lt.u32.totalorder %s1524_s19, %s1898_s0 }
   0x6   :  { %p1530_p2 = pnand %p1528_p1, %p1525_p0 }
   0x8   :  { %1533 = shalt.err (!%p1530_p2)
}
   0x9   :  { %s1534_s24 = scalar_lea.vmem %s18_s16, 256  ;;  %p1539_p4 = scmp.lt.s32.totalorder %s18_s16, %s18_s16 }
   0xa   :  { %p1535_p3 = scmp.ne.s32.totalorder %s18_s16, %s1534_s24  ;;  %p1540_p5 = scmp.lt.s32.totalorder %s1534_s24, %s1534_s24 }
   0xc   :  { %p1541_p6 = por %p1540_p5, %p1539_p4 }
   0xe   :  { %p1542_p7 = pnand %p1541_p6, %p1535_p3 }
  0x10   :  { %1545 = shalt.err (!%p1542_p7)
}
  0x11   :  { %s1597_s25 = smov 128   ;;  %s1598_s26 = smov 8  }
  0x12   :  { %23 = dma.hbm_to_vmem [thread:$0]  %s1898_s0, 256, %s18_s16, [#allocation3], %s1597_s25, %s1597_s25, %s1598_s26  }
  0x13   :  { %s1599_s29 = smov [#allocation5]   ;;  %s1546_s7 = scalar_lea.hbm %s1900_s2, 512 }
  0x14   :  { %s31_s30 = sshll.u32 %s1599_s29, 4  ;;  %p1547_p8 = scmp.ne.s32.totalorder %s1900_s2, %s1546_s7  ;;  %s32_s30 = int_to_ptr.vmem [resolvable:$true] %s31_s30 }
  0x15   :  { %p1550_p9 = scmp.lt.u32.totalorder %s1546_s7, %s1900_s2 }
  0x17   :  { %p1552_p10 = pnand %p1550_p9, %p1547_p8 }
  0x19   :  { %1555 = shalt.err (!%p1552_p10)
}
  0x1a   :  { %s1556_s12 = scalar_lea.vmem %s32_s30, 512  ;;  %p1561_p12 = scmp.lt.s32.totalorder %s32_s30, %s32_s30 }
  0x1b   :  { %p1557_p11 = scmp.ne.s32.totalorder %s32_s30, %s1556_s12  ;;  %p1562_p13 = scmp.lt.s32.totalorder %s1556_s12, %s1556_s12 }
  0x1d   :  { %p1563_p0 = por %p1562_p13, %p1561_p12 }
  0x1f   :  { %p1564_p1 = pnand %p1563_p0, %p1557_p11 }
  0x21   :  { %1567 = shalt.err (!%p1564_p1)
}
  0x22   :  { %37 = dma.hbm_to_vmem [thread:$0]  %s1900_s2, 512, %s32_s30, [#allocation6], %s1597_s25, %s1597_s25, %s1598_s26  }
  0x23   :  { %1590 = dma.done.wait [#allocation3], 256  }
  0x24   :  { %1591 = vsyncadd [#allocation3], 4294967040 }
  0x25   :  { %1592 = dma.done.wait [#allocation6], 512  }
  0x26   :  { %1593 = vsyncadd [#allocation6], 4294966784  ;;  %v1600_v0 = vmov 0.0   ;;  %vm1601_vm0 = vmmov 0   ;;  %v50_v1 = vld [vmem:[#allocation5] sm:$0xff]  ;;  %v51_v2 = vld [vmem:[#allocation5 + $0x8] sm:$0xff]  ;;  %v752_v34 = vlaneseq }
  0x27   :  { %1381 = vmatprep.subr.bf16.mxu0 %v1600_v0  ;;  %1385 = vmatprep.mubr.msk.bf16.mxu0 %vm1601_vm0, %v1600_v0  ;;  %v52_v3 = vld [vmem:[#allocation5 + $0x10] sm:$0xff]  ;;  %v54_v4 = vpack.c.bf16 %v51_v2, %v50_v1  ;;  %v53_v5 = vld [vmem:[#allocation5 + $0x18] sm:$0xff]  ;;  %vm63_vm1 = vcmask 261120   ;;  %s1602_s15 = smov 104   ;;  %s1603_s16 = smov 120   ;;  %vm130_vm2 = vcmask 64512  }
  0x28   :  { %1389 = vmatprep.subr.mxu1 %v1600_v0  ;;  %1391 = vmatprep.mubr.msk.f32.mxu1 %vm1601_vm0, %v1600_v0  ;;  %v55_v6 = vpack.c.bf16 %v53_v5, %v52_v3  ;;  %v47_v7 = vld [vmem:[#allocation2] sm:$0xff]  ;;  %v48_v8 = vld [vmem:[#allocation2 + $0x8] sm:$0xff]  ;;  %s1604_s17 = smov 112   ;;  %s1606_s18 = smov 64   ;;  %vm880_vm3 = vcmask 1043456   ;;  %v753_v36 = vshrl.u32 %v752_v34, 7 }
  0x29   :  { %1382 = vmatpush3.bf16.msra.mxu0 %v54_v4  ;;  %v49_v9 = vpack.c.bf16 %v48_v8, %v47_v7  ;;  %v1319_v10 = vld [vmem:[%s1901_s3] ss:$0 sm:$0xff]  ;;  %s1605_s3 = smov 96   ;;  %v1607_v38 = vmov 0   ;;  %v1337_v46 = vld [vmem:[%s1899_s1 + $0x1] sm:$0x1] }
  0x2a   :  { %1383 = vmatprep.subr.bf16.mxu0 %v1600_v0  ;;  %v745_v35 = vld [vmem:[%s1899_s1] sm:$0x1]  ;;  %v754_v37 = vsub.s32 0, %v753_v36  ;;  %vm749_vm6 = vcmp.eq.f32.partialorder %v1337_v46, -10000.0  ;;  %s1608_s1 = smov 16   ;;  %s1609_s23 = smov 24  }
  0x2b   :  { %vm746_vm4 = vcmp.eq.f32.partialorder %v745_v35, -10000.0  ;;  %v751_v50 = vsel %vm749_vm6, 1, %v1607_v38  ;;  %vm1280_vm8 = vcmask 130048   ;;  %vm1282_vm9 = vcmask 195584   ;;  %s1610_s24 = smov [#allocation7]  }
  0x2c   :  { %v750_v39 = vsel %vm746_vm4, 1, %v1607_v38  ;;  %v759_v55 = vrot.slane %v751_v50, %v754_v37  ;;  %s1306_s27 = sshll.u32 %s1610_s24, 4  ;;  %s1307_s27 = int_to_ptr.vmem [resolvable:$true] %s1306_s27 }
  0x2d   :  { %1384 = vmatpush3.bf16.msra.mxu0 %v55_v6  ;;  %v755_v40 = vrot.slane %v750_v39, %v754_v37  ;;  %s1568_s28 = scalar_lea.vmem %s1307_s27, 256  ;;  %p1573_p3 = scmp.lt.s32.totalorder %s1307_s27, %s1307_s27 }
  0x2e   :  { %1404 = vmatprep.subr.mxu0 %v1600_v0  ;;  %vm761_vm7 = vcmp.eq.s32.totalorder %v759_v55, 1  ;;  %p1569_p2 = scmp.ne.s32.totalorder %s1307_s27, %s1568_s28  ;;  %p1574_p4 = scmp.lt.s32.totalorder %s1568_s28, %s1568_s28 }
  0x2f   :  { %vm760_vm5 = vcmp.eq.s32.totalorder %v755_v40, 1 }
  0x30   :  { %1386 = vmatmul.mubr.msk.bf16.vlgmr.msra.gmra.mrb[0].mxu0 %vm63_vm1, %v49_v9  ;;  %p1575_p5 = por %p1574_p4, %p1573_p3 }
  0x31   :  { %1406 = vmatprep.mubr.msk.f32.mxu0 %vm1601_vm0, %v1600_v0 }
  0x32   :  { %p1576_p6 = pnand %p1575_p5, %p1569_p2 }
 0x103   :  { %v101_v11 = vpop.f32.mrb[0].mxu0 }
 0x104   :  { %v102_v12 = vadd.f32 %v1319_v10, %v101_v11  ;;  %v1387_v13 = vpop.f32.mrb[1].mxu0 }
 0x105   :  { %v104_v14 = vpop.f32.mrb[2].mxu0 }
 0x106   :  { %113 = vrot.lane.b32.xlu1 %v102_v12, %s1602_s15  ;;  %109 = vrot.lane.b32.xlu0 %v102_v12, %s1603_s16  ;;  %v1388_v15 = vpop.f32.mrb[3].mxu0  ;;  %v1680_v16 = vadd.f32 %v1319_v10, %v104_v14  ;;  %v866_v24 = vpack.c.bf16 %v102_v12, %v102_v12 }
 0x10a   :  { %111 = vrot.lane.b32.xlu0 %v102_v12, %s1604_s17  ;;  %116 = vrot.lane.b32.xlu1 %v1680_v16, %s1603_s16 }
 0x10e   :  { %118 = vrot.lane.b32.xlu0 %v1680_v16, %s1604_s17  ;;  %120 = vrot.lane.b32.xlu1 %v1680_v16, %s1602_s15 }
 0x112   :  { %128 = vrot.lane.b32.xlu0 %v102_v12, %s1605_s3 }
 0x178   :  { %v1685_v17 = vpop.permute.xlu0 %109  ;;  %v1687_v18 = vpop.permute.xlu1 %113 }
 0x179   :  { %205 = vrot.lane.b32.xlu1 %v1685_v17, %s1605_s3 }
 0x17c   :  { %v1690_v19 = vpop.permute.xlu0 %111  ;;  %v1694_v20 = vpop.permute.xlu1 %116 }
 0x17d   :  { %281 = vrot.lane.b32.xlu0 %v1690_v19, %s1605_s3  ;;  %357 = vrot.lane.b32.xlu1 %v1687_v18, %s1605_s3  ;;  %v871_v34 = vpack.c.bf16 %v1694_v20, %v1694_v20 }
 0x180   :  { %v1696_v21 = vpop.permute.xlu0 %118  ;;  %v1700_v23 = vpop.permute.xlu1 %120 }
 0x181   :  { %433 = vrot.lane.b32.xlu0 %v1680_v16, %s1605_s3  ;;  %509 = vrot.lane.b32.xlu1 %v1694_v20, %s1605_s3 }
 0x184   :  { %v129_v22 = vpop.permute.xlu0 %128 }
 0x185   :  { %585 = vrot.lane.b32.xlu0 %v1696_v21, %s1605_s3  ;;  %1390 = vmatpush3.xpose.msk.msra.mxu1 %vm130_vm2, %v129_v22 }
 0x186   :  { %661 = vrot.lane.b32.xlu1 %v1700_v23, %s1605_s3  ;;  %1394 = vmatprep.subr.mxu1 %v1600_v0 }
 0x188   :  { %1392 = vmatmul.mubr.msk.f32.vlgmr.msra.gmra.mrb[0].mxu1 %vm130_vm2, %v102_v12 }
 0x189   :  { %1396 = vmatprep.mubr.msk.f32.mxu1 %vm1601_vm0, %v1600_v0 }
 0x18a   :  { %875 = vrot.lane.b32.xlu1 %v866_v24, %s1606_s18 }
 0x1eb   :  { %v206_v25 = vpop.permute.xlu1 %205 }
 0x1ec   :  { %1395 = vmatpush3.xpose.msk.msra.mxu1 %vm130_vm2, %v206_v25  ;;  %v868_v25 = vpack.c.bf16 %v1690_v19, %v1690_v19 }
 0x1ed   :  { %1399 = vmatprep.subr.mxu1 %v1600_v0 }
 0x1ef   :  { %v282_v26 = vpop.permute.xlu0 %281  ;;  %1397 = vmatmul.mubr.msk.f32.vlgmr.msra.gmra.mrb[2].mxu1 %vm130_vm2, %v1685_v17  ;;  %v358_v27 = vpop.permute.xlu1 %357 }
 0x1f0   :  { %1400 = vmatpush3.xpose.msk.msra.mxu1 %vm130_vm2, %v282_v26  ;;  %1405 = vmatpush3.xpose.msk.msra.mxu0 %vm130_vm2, %v358_v27  ;;  %v867_v26 = vpack.c.bf16 %v1685_v17, %v1685_v17 }
 0x1f1   :  { %1401 = vmatprep.mubr.msk.f32.mxu1 %vm1601_vm0, %v1600_v0  ;;  %1409 = vmatprep.subr.mxu1 %v1600_v0 }
 0x1f2   :  { %1414 = vmatprep.subr.mxu0 %v1600_v0 }
 0x1f3   :  { %v434_v28 = vpop.permute.xlu0 %433  ;;  %1402 = vmatmul.mubr.msk.f32.vlgmr.msra.gmra.mrb[4].mxu1 %vm130_vm2, %v1690_v19  ;;  %1407 = vmatmul.mubr.msk.f32.vlgmr.msra.gmra.mrb[4].mxu0 %vm130_vm2, %v1687_v18  ;;  %v510_v29 = vpop.permute.xlu1 %509 }
 0x1f4   :  { %1410 = vmatpush3.xpose.msk.msra.mxu1 %vm130_vm2, %v434_v28  ;;  %1415 = vmatpush3.xpose.msk.msra.mxu0 %vm130_vm2, %v510_v29 }
 0x1f5   :  { %1411 = vmatprep.mubr.msk.f32.mxu1 %vm1601_vm0, %v1600_v0  ;;  %1416 = vmatprep.mubr.msk.f32.mxu0 %vm1601_vm0, %v1600_v0 }
 0x1f6   :  { %1419 = vmatprep.subr.mxu1 %v1600_v0  ;;  %1424 = vmatprep.subr.mxu0 %v1600_v0 }
 0x1f7   :  { %v586_v30 = vpop.permute.xlu0 %585  ;;  %1412 = vmatmul.mubr.msk.f32.vlgmr.msra.gmra.mrb[6].mxu1 %vm130_vm2, %v1680_v16  ;;  %1417 = vmatmul.mubr.msk.f32.vlgmr.msra.gmra.mrb[6].mxu0 %vm130_vm2, %v1694_v20 }
 0x1f8   :  { %v662_v31 = vpop.permute.xlu1 %661  ;;  %1420 = vmatpush3.xpose.msk.msra.mxu1 %vm130_vm2, %v586_v30  ;;  %1421 = vmatprep.mubr.msk.f32.mxu1 %vm1601_vm0, %v1600_v0  ;;  %v869_v30 = vpack.c.bf16 %v1687_v18, %v1687_v18 }
 0x1f9   :  { %1425 = vmatpush3.xpose.msk.msra.mxu0 %vm130_vm2, %v662_v31  ;;  %1426 = vmatprep.mubr.msk.f32.mxu0 %vm1601_vm0, %v1600_v0 }
 0x1fa   :  { %1429 = vmatprep.subr.bf16.mxu1 %v1600_v0  ;;  %1435 = vmatprep.subr.bf16.mxu0 %v1600_v0 }
 0x1fb   :  { %1422 = vmatmul.mubr.msk.f32.vlgmr.msra.gmra.mrb[8].mxu1 %vm130_vm2, %v1696_v21 }
 0x1fc   :  { %1427 = vmatmul.mubr.msk.f32.vlgmr.msra.gmra.mrb[8].mxu0 %vm130_vm2, %v1700_v23  ;;  %v876_v32 = vpop.permute.xlu1 %875  ;;  %1431 = vmatprep.mubr.msk.bf16.mxu1 %vm1601_vm0, %v1600_v0 }
 0x1fd   :  { %v882_v33 = vsel %vm880_vm3, %v876_v32, 0  ;;  %1437 = vmatprep.mubr.msk.bf16.mxu0 %vm1601_vm0, %v1600_v0 }
 0x1fe   :  { %1430 = vmatpush3.bf16.msra.mxu1 %v882_v33 }
 0x1ff   :  { %1441 = vmatprep.subr.bf16.mxu1 %v1600_v0 }
 0x25b   :  { %v201_v41 = vpop.f32.mrb[0].mxu1 }
 0x25c   :  { %v737_v42 = vmul.f32 0.35355338, %v201_v41  ;;  %v1393_v43 = vpop.f32.mrb[1].mxu1 }
 0x25e   :  { %v762_v44 = vsel %vm760_vm5, -10000.0, %v737_v42 }
 0x25f   :  { %v770_v45 = vsel %vm130_vm2, %v762_v44, -inf }
 0x260   :  { %771 = vmax.xlane.f32.xlu0 %v770_v45 }
 0x2c2   :  { %v277_v47 = vpop.f32.mrb[2].mxu1 }
 0x2c3   :  { %v738_v48 = vmul.f32 0.35355338, %v277_v47  ;;  %v1398_v49 = vpop.f32.mrb[3].mxu1 }
 0x2c5   :  { %v763_v51 = vsel %vm760_vm5, -10000.0, %v738_v48 }
 0x2c6   :  { %v353_v52 = vpop.f32.mrb[4].mxu1  ;;  %v429_v53 = vpop.f32.mrb[4].mxu0  ;;  %v773_v54 = vsel %vm130_vm2, %v763_v51, -inf }
 0x2c7   :  { %v739_v56 = vmul.f32 0.35355338, %v353_v52  ;;  %v740_v57 = vmul.f32 0.35355338, %v429_v53  ;;  %774 = vmax.xlane.f32.xlu1 %v773_v54  ;;  %v1403_v58 = vpop.f32.mrb[5].mxu1  ;;  %v1408_v59 = vpop.f32.mrb[5].mxu0 }
 0x2c9   :  { %v765_v60 = vsel %vm760_vm5, -10000.0, %v740_v57  ;;  %v764_v1 = vsel %vm760_vm5, -10000.0, %v739_v56  ;;  %v870_v57 = vpack.c.bf16 %v1680_v16, %v1680_v16 }
 0x2ca   :  { %v505_v61 = vpop.f32.mrb[6].mxu1  ;;  %v581_v62 = vpop.f32.mrb[6].mxu0  ;;  %v779_v63 = vsel %vm130_vm2, %v765_v60, -inf  ;;  %v776_v9 = vsel %vm130_vm2, %v764_v1, -inf }
 0x2cb   :  { %v741_v2 = vmul.f32 0.35355338, %v505_v61  ;;  %v742_v3 = vmul.f32 0.35355338, %v581_v62  ;;  %v1413_v4 = vpop.f32.mrb[7].mxu1  ;;  %780 = vmax.xlane.f32.xlu0 %v779_v63  ;;  %v1418_v5 = vpop.f32.mrb[7].mxu0 }
 0x2cd   :  { %v766_v6 = vsel %vm761_vm7, -10000.0, %v741_v2  ;;  %v1771_v12 = vsel %vm761_vm7, -10000.0, %v742_v3 }
 0x2ce   :  { %v657_v7 = vpop.f32.mrb[8].mxu1  ;;  %v782_v8 = vsel %vm130_vm2, %v766_v6, -inf  ;;  %v785_v15 = vsel %vm130_vm2, %v1771_v12, -inf }
 0x2cf   :  { %v733_v10 = vpop.f32.mrb[8].mxu0  ;;  %783 = vmax.xlane.f32.xlu1 %v782_v8  ;;  %v1423_v11 = vpop.f32.mrb[9].mxu1  ;;  %777 = vmax.xlane.f32.xlu0 %v776_v9  ;;  %v743_v27 = vmul.f32 0.35355338, %v657_v7  ;;  %v873_v8 = vpack.c.bf16 %v1700_v23, %v1700_v23  ;;  %v872_v9 = vpack.c.bf16 %v1696_v21, %v1696_v21 }
 0x2d0   :  { %v744_v13 = vmul.f32 0.35355338, %v733_v10  ;;  %v1428_v14 = vpop.f32.mrb[9].mxu0 }
 0x2d1   :  { %v768_v28 = vsel %vm761_vm7, -10000.0, %v743_v27 }
 0x2d2   :  { %v1776_v22 = vsel %vm761_vm7, -10000.0, %v744_v13  ;;  %v788_v29 = vsel %vm130_vm2, %v768_v28, -inf }
 0x2d3   :  { %786 = vmax.xlane.f32.xlu0 %v785_v15  ;;  %v791_v24 = vsel %vm130_vm2, %v1776_v22, -inf }
 0x2d7   :  { %792 = vmax.xlane.f32.xlu0 %v791_v24 }
 0x2e0   :  { %974 = vrot.lane.b32.xlu1 %v868_v25, %s1606_s18 }
 0x2ed   :  { %925 = vrot.lane.b32.xlu0 %v867_v26, %s1606_s18  ;;  %v772_v31 = vpop.xlane.xlu0 %771 }
 0x2ee   :  { %v794_v19 = vsub.f32 %v762_v44, %v772_v31 }
 0x2f0   :  { %v802_v32 = vmul.f32 1.442695, %v794_v19 }
 0x2f2   :  { %1492 = vpow2.f32 %v802_v32 }
 0x2fc   :  { %v1791_v33 = vpop.eup %1492 }
 0x2fd   :  { %v818_v17 = vsel %vm130_vm2, %v1791_v33, 0.0 }
 0x304   :  { %789 = vmax.xlane.f32.xlu1 %v788_v29 }
 0x315   :  { %1023 = vrot.lane.b32.xlu1 %v869_v30, %s1606_s18 }
 0x339   :  { %819 = vadd.xlane.f32.xlu1 %v818_v17 }
 0x34a   :  { %1121 = vrot.lane.b32.xlu1 %v871_v34, %s1606_s18 }
 0x354   :  { %v775_v35 = vpop.xlane.xlu1 %774 }
 0x355   :  { %v795_v36 = vsub.f32 %v763_v51, %v775_v35 }
 0x357   :  { %v804_v18 = vmul.f32 1.442695, %v795_v36 }
 0x358   :  { %v781_v37 = vpop.xlane.xlu0 %780 }
 0x359   :  { %1494 = vpow2.f32 %v804_v18  ;;  %v797_v38 = vsub.f32 %v765_v60, %v781_v37 }
 0x35b   :  { %v808_v39 = vmul.f32 1.442695, %v797_v38 }
 0x35c   :  { %v784_v40 = vpop.xlane.xlu1 %783  ;;  %v778_v41 = vpop.xlane.xlu0 %777 }
 0x35d   :  { %1496 = vpow2.f32 %v808_v39  ;;  %v798_v42 = vsub.f32 %v766_v6, %v784_v40  ;;  %v796_v43 = vsub.f32 %v764_v1, %v778_v41 }
 0x35f   :  { %v806_v44 = vmul.f32 1.442695, %v796_v43  ;;  %v810_v45 = vmul.f32 1.442695, %v798_v42 }
 0x360   :  { %v787_v46 = vpop.xlane.xlu0 %786  ;;  %v975_v61 = vpop.permute.xlu1 %974 }
 0x361   :  { %1498 = vpow2.f32 %v806_v44  ;;  %v799_v58 = vsub.f32 %v1771_v12, %v787_v46  ;;  %v980_v15 = vsel %vm880_vm3, %v975_v61, 0 }
 0x362   :  { %1500 = vpow2.f32 %v810_v45 }
 0x363   :  { %v1798_v47 = vpop.eup %1494  ;;  %v812_v59 = vmul.f32 1.442695, %v799_v58 }
 0x364   :  { %v793_v20 = vpop.xlane.xlu0 %792  ;;  %v821_v48 = vsel %vm130_vm2, %v1798_v47, 0.0 }
 0x365   :  { %822 = vadd.xlane.f32.xlu0 %v821_v48  ;;  %v801_v60 = vsub.f32 %v1776_v22, %v793_v20  ;;  %1502 = vpow2.f32 %v812_v59 }
 0x367   :  { %v1802_v49 = vpop.eup %1496  ;;  %v816_v62 = vmul.f32 1.442695, %v801_v60 }
 0x368   :  { %v926_v50 = vpop.permute.xlu0 %925  ;;  %v827_v51 = vsel %vm130_vm2, %v1802_v49, 0.0 }
 0x369   :  { %v931_v52 = vsel %vm880_vm3, %v926_v50, 0  ;;  %828 = vadd.xlane.f32.xlu0 %v827_v51  ;;  %1504 = vpow2.f32 %v816_v62 }
 0x36a   :  { %1436 = vmatpush3.bf16.msra.mxu0 %v931_v52 }
 0x36b   :  { %1447 = vmatprep.subr.bf16.mxu0 %v1600_v0  ;;  %v1808_v53 = vpop.eup %1498 }
 0x36c   :  { %v824_v54 = vsel %vm130_vm2, %v1808_v53, 0.0  ;;  %v1812_v55 = vpop.eup %1500 }
 0x36d   :  { %v830_v56 = vsel %vm130_vm2, %v1812_v55, 0.0 }
 0x36e   :  { %825 = vadd.xlane.f32.xlu1 %v824_v54 }
 0x36f   :  { %v1821_v3 = vpop.eup %1502 }
 0x370   :  { %v833_v16 = vsel %vm130_vm2, %v1821_v3, 0.0 }
 0x372   :  { %831 = vadd.xlane.f32.xlu1 %v830_v56 }
 0x373   :  { %v1825_v4 = vpop.eup %1504 }
 0x374   :  { %v839_v7 = vsel %vm130_vm2, %v1825_v4, 0.0 }
 0x37f   :  { %1072 = vrot.lane.b32.xlu0 %v870_v57, %s1606_s18 }
 0x391   :  { %v790_v63 = vpop.xlane.xlu1 %789 }
 0x392   :  { %v800_v1 = vsub.f32 %v768_v28, %v790_v63 }
 0x394   :  { %v814_v2 = vmul.f32 1.442695, %v800_v1 }
 0x395   :  { %v1024_v10 = vpop.permute.xlu1 %1023 }
 0x396   :  { %1506 = vpow2.f32 %v814_v2  ;;  %v1029_v30 = vsel %vm880_vm3, %v1024_v10, 0 }
 0x39e   :  { %834 = vadd.xlane.f32.xlu0 %v833_v16 }
 0x3a0   :  { %v1827_v5 = vpop.eup %1506 }
 0x3a1   :  { %v836_v6 = vsel %vm130_vm2, %v1827_v5, 0.0 }
 0x3a2   :  { %837 = vadd.xlane.f32.xlu1 %v836_v6  ;;  %840 = vadd.xlane.f32.xlu0 %v839_v7 }
 0x3b3   :  { %1219 = vrot.lane.b32.xlu1 %v873_v8, %s1606_s18 }
 0x3b8   :  { %1170 = vrot.lane.b32.xlu0 %v872_v9, %s1606_s18 }
 0x3c6   :  { %v820_v11 = vpop.xlane.xlu1 %819 }
 0x3c7   :  { %1508 = vrcp.f32 %v820_v11 }
 0x3ca   :  { %v1122_v22 = vpop.permute.xlu1 %1121 }
 0x3cb   :  { %v1127_v36 = vsel %vm880_vm3, %v1122_v22, 0 }
 0x3d1   :  { %v1509_v12 = vpop.eup %1508 }
 0x3d2   :  { %v850_v13 = vmul.f32 %v1509_v12, %v1791_v33 }
 0x3d4   :  { %v858_v14 = vpack.c.bf16 %v850_v13, %v850_v13 }
 0x3d6   :  { %1432 = vmatmul.mubr.msk.bf16.vlgmr.msra.gmra.mrb[12].mxu1 %vm130_vm2, %v858_v14 }
 0x3d7   :  { %1442 = vmatpush3.bf16.msra.mxu1 %v980_v15  ;;  %1443 = vmatprep.mubr.msk.bf16.mxu1 %vm1601_vm0, %v1600_v0 }
 0x3d8   :  { %1453 = vmatprep.subr.bf16.mxu1 %v1600_v0 }
 0x3f2   :  { %v823_v21 = vpop.xlane.xlu0 %822 }
 0x3f3   :  { %1510 = vrcp.f32 %v823_v21 }
 0x3f6   :  { %v829_v23 = vpop.xlane.xlu0 %828 }
 0x3f7   :  { %1512 = vrcp.f32 %v829_v23 }
 0x3fa   :  { %v1073_v33 = vpop.permute.xlu0 %1072 }
 0x3fb   :  { %v826_v24 = vpop.xlane.xlu1 %825  ;;  %v1078_v18 = vsel %vm880_vm3, %v1073_v33, 0 }
 0x3fc   :  { %1514 = vrcp.f32 %v826_v24 }
 0x3fd   :  { %v1511_v25 = vpop.eup %1510 }
 0x3fe   :  { %v851_v26 = vmul.f32 %v1511_v25, %v1798_v47 }
 0x3ff   :  { %v832_v27 = vpop.xlane.xlu1 %831 }
 0x400   :  { %1516 = vrcp.f32 %v832_v27  ;;  %v859_v28 = vpack.c.bf16 %v851_v26, %v851_v26 }
 0x401   :  { %v1513_v29 = vpop.eup %1512 }
 0x402   :  { %1438 = vmatmul.mubr.msk.bf16.vlgmr.msra.gmra.mrb[12].mxu0 %vm130_vm2, %v859_v28  ;;  %v853_v31 = vmul.f32 %v1513_v29, %v1802_v49 }
 0x403   :  { %1448 = vmatpush3.bf16.msra.mxu0 %v1029_v30  ;;  %1449 = vmatprep.mubr.msk.bf16.mxu0 %vm1601_vm0, %v1600_v0 }
 0x404   :  { %1459 = vmatprep.subr.bf16.mxu0 %v1600_v0  ;;  %v861_v17 = vpack.c.bf16 %v853_v31, %v853_v31 }
 0x406   :  { %v1515_v19 = vpop.eup %1514 }
 0x407   :  { %v852_v32 = vmul.f32 %v1515_v19, %v1808_v53 }
 0x409   :  { %v860_v34 = vpack.c.bf16 %v852_v32, %v852_v32 }
 0x40a   :  { %v1517_v35 = vpop.eup %1516  ;;  %1450 = vmatmul.mubr.msk.bf16.vlgmr.msra.gmra.mrb[16].mxu0 %vm130_vm2, %v861_v17 }
 0x40b   :  { %1460 = vmatpush3.bf16.msra.mxu0 %v1127_v36  ;;  %1444 = vmatmul.mubr.msk.bf16.vlgmr.msra.gmra.mrb[16].mxu1 %vm130_vm2, %v860_v34  ;;  %v854_v37 = vmul.f32 %v1517_v35, %v1812_v55 }
 0x40c   :  { %1454 = vmatpush3.bf16.msra.mxu1 %v1078_v18  ;;  %1455 = vmatprep.mubr.msk.bf16.mxu1 %vm1601_vm0, %v1600_v0 }
 0x40d   :  { %1465 = vmatprep.subr.bf16.mxu1 %v1600_v0  ;;  %1461 = vmatprep.mubr.msk.bf16.mxu0 %vm1601_vm0, %v1600_v0  ;;  %v862_v38 = vpack.c.bf16 %v854_v37, %v854_v37 }
 0x40e   :  { %1471 = vmatprep.subr.bf16.mxu0 %v1600_v0 }
 0x413   :  { %1456 = vmatmul.mubr.msk.bf16.vlgmr.msra.gmra.mrb[20].mxu1 %vm130_vm2, %v862_v38 }
 0x414   :  { %1467 = vmatprep.mubr.msk.bf16.mxu1 %vm1601_vm0, %v1600_v0 }
 0x42b   :  { %v835_v39 = vpop.xlane.xlu0 %834 }
 0x42c   :  { %1518 = vrcp.f32 %v835_v39 }
 0x42f   :  { %v838_v40 = vpop.xlane.xlu1 %837  ;;  %v841_v41 = vpop.xlane.xlu0 %840 }
 0x430   :  { %1520 = vrcp.f32 %v838_v40 }
 0x431   :  { %1522 = vrcp.f32 %v841_v41 }
 0x433   :  { %v1171_v42 = vpop.permute.xlu0 %1170  ;;  %v1220_v46 = vpop.permute.xlu1 %1219 }
 0x434   :  { %v1176_v43 = vsel %vm880_vm3, %v1171_v42, 0  ;;  %v1225_v50 = vsel %vm880_vm3, %v1220_v46, 0 }
 0x435   :  { %1466 = vmatpush3.bf16.msra.mxu1 %v1176_v43 }
 0x436   :  { %v1519_v44 = vpop.eup %1518 }
 0x437   :  { %v855_v45 = vmul.f32 %v1519_v44, %v1821_v3 }
 0x439   :  { %v863_v47 = vpack.c.bf16 %v855_v45, %v855_v45 }
 0x43a   :  { %v1521_v20 = vpop.eup %1520 }
 0x43b   :  { %v1523_v48 = vpop.eup %1522  ;;  %v856_v49 = vmul.f32 %v1521_v20, %v1827_v5  ;;  %1462 = vmatmul.mubr.msk.bf16.vlgmr.msra.gmra.mrb[20].mxu0 %vm130_vm2, %v863_v47 }
 0x43c   :  { %1472 = vmatpush3.bf16.msra.mxu0 %v1225_v50  ;;  %1473 = vmatprep.mubr.msk.bf16.mxu0 %vm1601_vm0, %v1600_v0  ;;  %v857_v51 = vmul.f32 %v1523_v48, %v1825_v4 }
 0x43d   :  { %v864_v52 = vpack.c.bf16 %v856_v49, %v856_v49 }
 0x43e   :  { %v865_v53 = vpack.c.bf16 %v857_v51, %v857_v51 }
 0x43f   :  { %1468 = vmatmul.mubr.msk.bf16.vlgmr.msra.gmra.mrb[24].mxu1 %vm130_vm2, %v864_v52 }
 0x443   :  { %1474 = vmatmul.mubr.msk.bf16.vlgmr.msra.gmra.mrb[24].mxu0 %vm130_vm2, %v865_v53 }
 0x4a9   :  { %v918_v54 = vpop.f32.mrb[12].mxu1 }
 0x4aa   :  { %v1433_v55 = vpop.f32.mrb[13].mxu1 }
 0x4ab   :  { %v921_v56 = vpop.f32.mrb[14].mxu1 }
 0x4ac   :  { %v1434_v57 = vpop.f32.mrb[15].mxu1 }
 0x4d5   :  { %v967_v58 = vpop.f32.mrb[12].mxu0 }
 0x4d6   :  { %1268 = vrot.lane.b32.xlu0 %v967_v58, %s1598_s26  ;;  %v1439_v59 = vpop.f32.mrb[13].mxu0 }
 0x4d7   :  { %v970_v60 = vpop.f32.mrb[14].mxu0 }
 0x4d8   :  { %v1440_v61 = vpop.f32.mrb[15].mxu0 }
 0x4dd   :  { %v1065_v62 = vpop.f32.mrb[16].mxu0 }
 0x4de   :  { %v1016_v0 = vpop.f32.mrb[16].mxu1  ;;  %v1451_v63 = vpop.f32.mrb[17].mxu0 }
 0x4df   :  { %v1445_v1 = vpop.f32.mrb[17].mxu1  ;;  %1272 = vrot.lane.b32.xlu0 %v1016_v0, %s1608_s1  ;;  %v1068_v2 = vpop.f32.mrb[18].mxu0 }
 0x4e0   :  { %v1019_v3 = vpop.f32.mrb[18].mxu1  ;;  %v1452_v16 = vpop.f32.mrb[19].mxu0 }
 0x4e1   :  { %v1446_v4 = vpop.f32.mrb[19].mxu1 }
 0x4e3   :  { %1276 = vrot.lane.b32.xlu0 %v1065_v62, %s1609_s23 }
 0x4e6   :  { %v1114_v5 = vpop.f32.mrb[20].mxu1 }
 0x4e7   :  { %v1457_v6 = vpop.f32.mrb[21].mxu1 }
 0x4e8   :  { %v1117_v7 = vpop.f32.mrb[22].mxu1 }
 0x4e9   :  { %v1458_v8 = vpop.f32.mrb[23].mxu1 }
 0x50e   :  { %v1163_v9 = vpop.f32.mrb[20].mxu0 }
 0x50f   :  { %1285 = vrot.lane.b32.xlu1 %v1163_v9, %s1598_s26  ;;  %v1463_v10 = vpop.f32.mrb[21].mxu0 }
 0x510   :  { %v1166_v11 = vpop.f32.mrb[22].mxu0 }
 0x511   :  { %v1464_v12 = vpop.f32.mrb[23].mxu0 }
 0x512   :  { %v1212_v13 = vpop.f32.mrb[24].mxu1 }
 0x513   :  { %v1469_v14 = vpop.f32.mrb[25].mxu1  ;;  %1289 = vrot.lane.b32.xlu1 %v1212_v13, %s1608_s1 }
 0x514   :  { %v1215_v15 = vpop.f32.mrb[26].mxu1 }
 0x515   :  { %v1470_v21 = vpop.f32.mrb[27].mxu1 }
 0x516   :  { %v1261_v23 = vpop.f32.mrb[24].mxu0 }
 0x517   :  { %1293 = vrot.lane.b32.xlu1 %v1261_v23, %s1609_s23  ;;  %v1475_v22 = vpop.f32.mrb[25].mxu0 }
 0x518   :  { %v1264_v24 = vpop.f32.mrb[26].mxu0 }
 0x519   :  { %v1476_v25 = vpop.f32.mrb[27].mxu0 }
 0x548   :  { %v1269_v26 = vpop.permute.xlu0 %1268 }
 0x549   :  { %v1279_v28 = vsel %vm130_vm2, %v918_v54, %v1269_v26 }
 0x551   :  { %v1273_v27 = vpop.permute.xlu0 %1272 }
 0x552   :  { %v1281_v29 = vsel %vm1280_vm8, %v1279_v28, %v1273_v27 }
 0x555   :  { %v1277_v30 = vpop.permute.xlu0 %1276 }
 0x556   :  { %v1283_v31 = vsel %vm1282_vm9, %v1281_v29, %v1277_v30 }
 0x557   :  { %1299 = vst.msk [vmem:[#allocation7] sm:$0xff] %vm63_vm1, %v1283_v31 }
 0x581   :  { %v1286_v19 = vpop.permute.xlu1 %1285 }
 0x582   :  { %v1296_v33 = vsel %vm130_vm2, %v1114_v5, %v1286_v19 }
 0x585   :  { %v1290_v32 = vpop.permute.xlu1 %1289 }
 0x586   :  { %v1297_v17 = vsel %vm1280_vm8, %v1296_v33, %v1290_v32 }
 0x589   :  { %v1294_v34 = vpop.permute.xlu1 %1293 }
 0x58a   :  { %v1298_v35 = vsel %vm1282_vm9, %v1297_v17, %v1294_v34 }
 0x58b   :  { %1300 = vst.msk [vmem:[#allocation7 + $0x8] sm:$0xff] %vm63_vm1, %v1298_v35 }
 0x58c   :  { %1579 = shalt.err (!%p1576_p6)
}
 0x58d   :  { %s1580_s5 = scalar_lea.hbm %s1902_s4, 256 }
 0x58e   :  { %p1581_p7 = scmp.ne.s32.totalorder %s1902_s4, %s1580_s5  ;;  %p1584_p8 = scmp.lt.u32.totalorder %s1580_s5, %s1902_s4 }
 0x590   :  { %p1586_p9 = pnand %p1584_p8, %p1581_p7 }
 0x592   :  { %1589 = shalt.err (!%p1586_p9)
}
 0x593   :  { %1312 = dma.vmem_to_hbm [thread:$0]  %s1307_s27, 256, %s1902_s4, [#allocation4], %s1597_s25, %s1597_s25, %s1598_s26  }
 0x594   :  { %1594 = dma.done.wait [#allocation4], 256  }
 0x595   :  { %1595 = vsyncadd [#allocation4], 4294967040 }
 0x596   :  { %1316 = vsyncpa [#allocation3], 1 }
 0x597   :  { %1317 = vsyncpa [#allocation6], 1 }
 0x598   :  { %1318 = vsyncpa [#allocation4], 1 }

</bundles_post_ra>
